<compile_context>
chip_gen: v6e
topology: v6e:2x2x1
jax: 0.10.0
libtpu: 0.0.40
codegen_flags: <defaults>
</compile_context>

<pallas_src>
import math
from functools import partial

import jax
import jax.numpy as jnp
from jax import lax
from jax.experimental import pallas as pl
from jax.experimental.pallas import tpu as pltpu


def _sinusoidal_kernel(x_ref, out_ref, *, steps, half_dim, neg_log_scale):
    # x_ref:   (TB, 1)    float32 timesteps
    # out_ref: (TB, dim)  dim == 2 * half_dim
    tb, dim = out_ref.shape

    # Build the (1, dim) frequency and phase rows in-kernel (EUP exp; no DMA).
    col = lax.broadcasted_iota(jnp.int32, (1, dim), 1)          # 0..dim-1
    first_half = col < half_dim
    j = jnp.where(first_half, col, col - half_dim).astype(jnp.float32)
    freq = jnp.exp(j * jnp.float32(neg_log_scale))              # [f, f]
    phase = jnp.where(first_half, jnp.float32(0.0),
                      jnp.float32(0.5 * math.pi))               # [0.., pi/2..]

    # (steps * x) * freq  -- same association as the PyTorch module.
    xs = x_ref[...] * jnp.float32(steps)                        # (TB, 1)
    angle = xs * freq + phase                                   # (TB, dim)

    # cos(a) == sin(a + pi/2): one full-width lane-dense store.
    out_ref[...] = jnp.sin(angle).astype(out_ref.dtype)


def sinusoidal_pos_emb(x, dim, steps=100, *, block_rows=512,
                       out_dtype=jnp.float32):
    """x: (B,) continuous timesteps -> (B, dim) sinusoidal embedding."""
    assert dim % 2 == 0, "dim must be even"
    assert dim >= 4, "dim must be >= 4 (half_dim - 1 division)"
    half_dim = dim // 2
    b = x.shape[0]

    neg_log_scale = -math.log(10000.0) / (half_dim - 1)
    x2d = x.astype(jnp.float32).reshape(b, 1)

    # Tile over the batch: full batch if small, else `block_rows` (multiple of 8).
    tb = b if b <= block_rows else block_rows
    grid = (pl.cdiv(b, tb),)

    kernel = partial(_sinusoidal_kernel, steps=float(steps), half_dim=half_dim,
                     neg_log_scale=neg_log_scale)

    out_itemsize = jnp.dtype(out_dtype).itemsize
    cost = pl.CostEstimate(
        flops=20 * b * dim,                       # sin polynomial + mul/add
        transcendentals=b * dim + grid[0] * dim,  # sin per element + per-block exp
        bytes_accessed=4 * b + out_itemsize * b * dim,
    )

    return pl.pallas_call(
        kernel,
        out_shape=jax.ShapeDtypeStruct((b, dim), out_dtype),
        grid=grid,
        in_specs=[pl.BlockSpec((tb, 1), lambda i: (i, 0))],
        out_specs=pl.BlockSpec((tb, dim), lambda i: (i, 0)),
        compiler_params=pltpu.CompilerParams(
            dimension_semantics=("parallel",)),
        cost_estimate=cost,
    )(x2d)


def _reference(x, dim, steps=100):
    # Pure-JAX port of the PyTorch forward (same op order / association).
    half_dim = dim // 2
    scale = math.log(10000.0) / (half_dim - 1)
    freqs = jnp.exp(jnp.arange(half_dim, dtype=jnp.float32) * -scale)
    xs = (steps * x.astype(jnp.float32))[:, None] * freqs[None, :]
    return jnp.concatenate([jnp.sin(xs), jnp.cos(xs)], axis=-1)


if __name__ == "__main__":
    key = jax.random.PRNGKey(0)

    # Small case, matching the module's typical use (continuous t in [0, 1)).
    B, DIM, STEPS = 8, 32, 100
    x = jax.random.uniform(key, (B,), dtype=jnp.float32)

    out = jax.block_until_ready(sinusoidal_pos_emb(x, DIM, steps=STEPS))
    ref = _reference(x, DIM, steps=STEPS)
    assert out.shape == (B, DIM), out.shape
    assert out.dtype == jnp.float32
    # atol 1e-4: angles reach steps*x ~ 100 in f32, so ~1e-5-scale rounding
    # differences (exp/sin impl + the cos(a)==sin(a+pi/2) fold) are expected.
    err = float(jnp.max(jnp.abs(out - ref)))
    assert jnp.allclose(out, ref, atol=1e-4, rtol=1e-4), err

    # Larger batch to exercise the tiled / pipelined path (grid of 3 blocks).
    B2 = 768
    x2 = jax.random.uniform(jax.random.PRNGKey(1), (B2,), dtype=jnp.float32)
    out2 = jax.block_until_ready(
        sinusoidal_pos_emb(x2, DIM, steps=STEPS, block_rows=256))
    ref2 = _reference(x2, DIM, steps=STEPS)
    assert out2.shape == (B2, DIM)
    err2 = float(jnp.max(jnp.abs(out2 - ref2)))
    assert jnp.allclose(out2, ref2, atol=1e-4, rtol=1e-4), err2

    print("KERNEL_OK")
</pallas_src>

<mosaic_0001>
module attributes {stable_mosaic.version = 11 : i64} {
  func.func @_sinusoidal_kernel(%arg0: i32, %arg1: memref<8x1xf32, #tpu.memory_space<vmem>>, %arg2: memref<8x32xf32, #tpu.memory_space<vmem>>) attributes {dimension_semantics = [#tpu.dimension_semantics<parallel>], iteration_bounds = array<i64: 1>, scalar_prefetch = 0 : i64, scratch_operands = 0 : i64, tpu.core_type = #tpu.core_type<tc>, window_params = [{transform_indices = @transform_0, window_bounds = array<i64: 8, 1>}, {transform_indices = @transform_1, window_bounds = array<i64: 8, 32>}]} {
    %0 = tpu.iota {dimensions = array<i32: 1>} : vector<1x32xi32>
    %c16_i32 = arith.constant 16 : i32
    %1 = vector.broadcast %c16_i32 : i32 to vector<1x32xi32>
    %2 = arith.cmpi slt, %0, %1 : vector<1x32xi32>
    %c16_i32_0 = arith.constant 16 : i32
    %3 = vector.broadcast %c16_i32_0 : i32 to vector<1x32xi32>
    %4 = arith.subi %0, %3 : vector<1x32xi32>
    %5 = arith.select %2, %0, %4 : vector<1x32xi1>, vector<1x32xi32>
    %6 = arith.sitofp %5 : vector<1x32xi32> to vector<1x32xf32>
    %cst = arith.constant -0.614022672 : f32
    %7 = vector.broadcast %cst : f32 to vector<1x32xf32>
    %8 = arith.mulf %6, %7 : vector<1x32xf32>
    %9 = math.exp %8 : vector<1x32xf32>
    %cst_1 = arith.constant 0.000000e+00 : f32
    %cst_2 = arith.constant 1.57079637 : f32
    %10 = vector.broadcast %cst_1 : f32 to vector<1x32xf32>
    %11 = vector.broadcast %cst_2 : f32 to vector<1x32xf32>
    %12 = arith.select %2, %10, %11 : vector<1x32xi1>, vector<1x32xf32>
    %c0 = arith.constant 0 : index
    %c0_3 = arith.constant 0 : index
    %13 = vector.load %arg1[%c0, %c0_3] : memref<8x1xf32, #tpu.memory_space<vmem>>, vector<8x1xf32>
    %cst_4 = arith.constant 1.000000e+02 : f32
    %14 = vector.broadcast %cst_4 : f32 to vector<8x1xf32>
    %15 = arith.mulf %13, %14 : vector<8x1xf32>
    %16 = vector.broadcast %15 : vector<8x1xf32> to vector<8x32xf32>
    %17 = vector.broadcast %9 : vector<1x32xf32> to vector<8x32xf32>
    %18 = arith.mulf %16, %17 : vector<8x32xf32>
    %19 = vector.broadcast %12 : vector<1x32xf32> to vector<8x32xf32>
    %20 = arith.addf %18, %19 : vector<8x32xf32>
    %21 = math.sin %20 : vector<8x32xf32>
    %c0_5 = arith.constant 0 : index
    %c0_6 = arith.constant 0 : index
    %22 = vector.load %arg2[%c0_5, %c0_6] : memref<8x32xf32, #tpu.memory_space<vmem>>, vector<8x32xf32>
    tpu.vector_store %arg2[%c0_5, %c0_6], %21 {strides = array<i32>} : memref<8x32xf32, #tpu.memory_space<vmem>>, vector<8x32xf32>,
    return
  }
  func.func @transform_0(%arg0: i32) -> (i32, i32) {
    %c0_i32 = arith.constant 0 : i32
    %c0_i32_0 = arith.constant 0 : i32
    return %arg0, %c0_i32 : i32, i32
  }
  func.func @transform_1(%arg0: i32) -> (i32, i32) {
    %c0_i32 = arith.constant 0 : i32
    %c0_i32_0 = arith.constant 0 : i32
    return %arg0, %c0_i32 : i32, i32
  }
}

</mosaic_0001>

<bundles_post_ra>
// kernel: tpu_custom_call.1
= control target key start
LH: loop header
LB: loop body
LE: loop exit
PB: predicated region body
PF: predicated region fallthrough
CT: control target
= control target key end

     0   :  { %v195_v1 = vmov 0   ;;  %s241_s0 = inlined_call_operand.vmem [shape: f32[8,1], index: 0, kind: input, shape index: {}]   ;;  %s242_s1 = inlined_call_operand.hbm [shape: f32[8,32], index: 1, kind: output, shape index: {}]  }
   0x1   :  { %v19_v0 = vld [vmem:[%s241_s0] sm:$0xff]  ;;  %166 = vset.pattern.permute.xlu0 %v195_v1 }
   0x2   :  { %v20_v2 = vmul.f32 100.0, %v19_v0 }
   0x3   :  { %6 = vsyncpa [#allocation3], 0  ;;  %v9_v3 = vlaneseq  ;;  %v196_v12 = vmov 1.5707964   ;;  %v197_v27 = vmov 2102212464  }
   0x4   :  { %23 = vperm.xlu0 %166, %v20_v2   ;;  %v198_v29 = vmov 920167782   ;;  %v199_v33 = vmov 1326507024   ;;  %v200_v35 = vmov 683565275  }
   0x5   :  { %v10_v4 = vand.u32 127, %v9_v3  ;;  %v201_v37 = vmov 2475754826   ;;  %v202_v40 = vmov 2131351028   ;;  %s203_s0 = smov [#allocation2]  }
   0x6   :  { %s140_s8 = sshll.u32 %s203_s0, 4  ;;  %vm132_vm13 = vcmask 261120   ;;  %s141_s8 = int_to_ptr.vmem [resolvable:$true] %s140_s8 }
   0x7   :  { %v148_v5 = vadd.s32 4294967280, %v10_v4  ;;  %vm11_vm0 = vcmp.lt.s32.totalorder %v10_v4, 16  ;;  %s173_s9 = scalar_lea.vmem %s141_s8, 128  ;;  %p178_p1 = scmp.lt.s32.totalorder %s141_s8, %s141_s8 }
   0x8   :  { %v18_v13 = vsel %vm11_vm0, 0.0, %v196_v12  ;;  %p174_p0 = scmp.ne.s32.totalorder %s141_s8, %s173_s9  ;;  %p179_p2 = scmp.lt.s32.totalorder %s173_s9, %s173_s9 }
   0x9   :  { %v13_v6 = vsel %vm11_vm0, %v10_v4, %v148_v5 }
   0xa   :  { %v14_v7 = vcvt.s32.f32 %v13_v6  ;;  %p180_p3 = por %p179_p2, %p178_p1 }
   0xc   :  { %v15_v8 = vmul.f32 -0.6140227, %v14_v7  ;;  %p181_p4 = pnand %p180_p3, %p174_p0 }
   0xe   :  { %v16_v9 = vmul.f32 1.442695, %v15_v8 }
  0x10   :  { %167 = vpow2.f32 %v16_v9 }
  0x1d   :  { %v168_v10 = vpop.eup %167 }
  0x7f   :  { %v24_v11 = vpop.permute.xlu0 %23 }
  0x80   :  { %v26_v14 = vmul.f32 %v168_v10, %v24_v11 }
  0x82   :  { %v217_v15 = vadd.f32 %v26_v14, %v18_v13 }
  0x84   :  { %v31_v16 = vand.u32 2139095040, %v217_v15  ;;  %v28_v17 = vand.u32 2147483647, %v217_v15  ;;  %vm30_vm8 = vcmp.lt.s32.totalorder %v217_v15, 0  ;;  %vm120_vm14 = vweird.f32 %v217_v15 }
  0x86   :  { %v32_v18 = vshrl.u32 %v31_v16, 23  ;;  %v35_v20 = vand.u32 8388607, %v28_v17  ;;  %vm29_vm9 = vcmp.le.f32.partialorder %v28_v17, 0.7853982 }
  0x88   :  { %v149_v19 = vadd.s32 4294967169, %v32_v18  ;;  %v36_v23 = vor.u32 8388608, %v35_v20 }
  0x8a   :  { %v38_v21 = vadd.s32 1, %v149_v19  ;;  %v76_v31 = vshll.u32 %v36_v23, 8 }
  0x8c   :  { %vm39_vm1 = vcmp.gt.s32.totalorder %v38_v21, 0 }
  0x8d   :  { %v40_v22 = vsel %vm39_vm1, %v38_v21, 0 }
  0x8e   :  { %v42_v24 = vand.u32 31, %v40_v22  ;;  %v41_v25 = vshrl.u32 %v40_v22, 5 }
  0x90   :  { %v43_v26 = vsub.s32 32, %v42_v24  ;;  %v54_v28 = vshll.u32 %v197_v27, %v42_v24  ;;  %v57_v30 = vshll.u32 %v198_v29, %v42_v24  ;;  %v45_v36 = vshll.u32 %v200_v35, %v42_v24 }
  0x91   :  { %v48_v39 = vshll.u32 %v201_v37, %v42_v24  ;;  %v51_v42 = vshll.u32 %v202_v40, %v42_v24  ;;  %vm63_vm2 = vcmp.lt.s32.totalorder %v41_v25, 4  ;;  %vm60_vm3 = vcmp.lt.s32.totalorder %v41_v25, 1 }
  0x92   :  { %v55_v32 = vshrl.u32 %v198_v29, %v43_v26  ;;  %v58_v34 = vshrl.u32 %v199_v33, %v43_v26  ;;  %v46_v38 = vshrl.u32 %v201_v37, %v43_v26  ;;  %v49_v41 = vshrl.u32 %v202_v40, %v43_v26 }
  0x93   :  { %v52_v43 = vshrl.u32 %v197_v27, %v43_v26  ;;  %v44_v47 = vshrl.u32 %v200_v35, %v43_v26  ;;  %vm61_vm4 = vcmp.lt.s32.totalorder %v41_v25, 2  ;;  %vm62_vm5 = vcmp.lt.s32.totalorder %v41_v25, 3 }
  0x94   :  { %v56_v44 = vor.u32 %v55_v32, %v54_v28  ;;  %v59_v45 = vor.u32 %v58_v34, %v57_v30  ;;  %v47_v46 = vor.u32 %v46_v38, %v45_v36  ;;  %v50_v48 = vor.u32 %v49_v41, %v48_v39 }
  0x95   :  { %v53_v49 = vor.u32 %v52_v43, %v51_v42 }
  0x96   :  { %v69_v50 = vsel %vm63_vm2, %v56_v44, 920167782  ;;  %v73_v51 = vsel %vm63_vm2, %v59_v45, 1326507024  ;;  %v68_v53 = vsel %vm60_vm3, %v47_v46, %v50_v48  ;;  %v64_v56 = vsel %vm60_vm3, %v44_v47, %v47_v46 }
  0x97   :  { %v65_v52 = vsel %vm63_vm2, %v53_v49, 2102212464  ;;  %v70_v54 = vsel %vm62_vm5, %v53_v49, %v69_v50  ;;  %v72_v55 = vsel %vm60_vm3, %v50_v48, %v53_v49  ;;  %v74_v59 = vsel %vm62_vm5, %v56_v44, %v73_v51 }
  0x98   :  { %v66_v57 = vsel %vm62_vm5, %v50_v48, %v65_v52  ;;  %v71_v58 = vsel %vm61_vm4, %v68_v53, %v70_v54  ;;  %v75_v60 = vsel %vm61_vm4, %v72_v55, %v74_v59 }
  0x99   :  { %v223_v61 = vmul.u32.u64.low %v76_v31, %v71_v58  ;;  %v224_v62 = vmul.u32.u64.high %v76_v31, %v71_v58, %v223_v61  ;;  %v226_v63 = vmul.u32.u64.low %v76_v31, %v75_v60  ;;  %v227_v0 = vmul.u32.u64.high %v76_v31, %v75_v60, %v226_v63 }
  0x9a   :  { %v67_v1 = vsel %vm61_vm4, %v64_v56, %v66_v57 }
  0x9b   :  { %v86_v2 = vadd.s32 1, %v224_v62  ;;  %v83_v3 = vmul.u32 %v76_v31, %v67_v1  ;;  %vm85_vm6 = vc.u32 %v227_v0, %v223_v61  ;;  %v84_v16 = vadd.s32 %v223_v61, %v227_v0 }
  0x9d   :  { %v87_v4 = vsel %vm85_vm6, %v86_v2, %v224_v62 }
  0x9e   :  { %v88_v5 = vadd.s32 %v87_v4, %v83_v3 }
  0xa0   :  { %v89_v6 = vadd.s32 536870912, %v88_v5 }
  0xa2   :  { %v90_v7 = vshrl.u32 %v89_v6, 30 }
  0xa4   :  { %v91_v8 = vshll.u32 %v90_v7, 30  ;;  %v114_v30 = vsub.s32 4, %v90_v7 }
  0xa6   :  { %v92_v9 = vsub.s32 %v88_v5, %v91_v8  ;;  %v115_v33 = vsel %vm30_vm8, %v114_v30, %v90_v7 }
  0xa7   :  { %v117_v34 = vsel %vm29_vm9, 0, %v115_v33 }
  0xa8   :  { %v94_v10 = vsub.s32 0, %v92_v9  ;;  %v121_v35 = vadd.s32 3, %v117_v34 }
  0xaa   :  { %v150_v11 = vmin.u32 %v94_v10, %v92_v9  ;;  %v122_v36 = vand.u32 3, %v121_v35 }
  0xac   :  { %v96_v12 = vclz %v150_v11  ;;  %vm127_vm10 = vcmp.eq.s32.totalorder %v122_v36, 2  ;;  %vm124_vm11 = vcmp.eq.s32.totalorder %v122_v36, 0  ;;  %vm123_vm12 = vcmp.lt.s32.totalorder %v122_v36, 2 }
  0xae   :  { %v151_v13 = vadd.s32 4294967294, %v96_v12 }
  0xb0   :  { %vm152_vm7 = vcmp.lt.s32.totalorder %v151_v13, 0 }
  0xb1   :  { %v99_v14 = vsel %vm152_vm7, 0, %v151_v13 }
  0xb2   :  { %v100_v18 = vsub.s32 32, %v99_v14  ;;  %v104_v19 = vsub.s32 4294967266, %v99_v14  ;;  %v101_v20 = vshll.u32 %v92_v9, %v99_v14 }
  0xb4   :  { %v102_v21 = vshrl.u32 %v84_v16, %v100_v18  ;;  %v105_v22 = vadd.s32 127, %v104_v19 }
  0xb6   :  { %v103_v23 = vor.u32 %v102_v21, %v101_v20  ;;  %v106_v24 = vshll.u32 %v105_v22, 23 }
  0xb8   :  { %v107_v25 = vor.u32 4788187, %v106_v24  ;;  %v110_v27 = vcvt.s32.f32 %v103_v23 }
  0xba   :  { %v108_v26 = vand.u32 2147483647, %v107_v25 }
  0xbc   :  { %v111_v28 = vmul.f32 %v110_v27, %v108_v26 }
  0xbe   :  { %v112_v29 = vxor.u32 2147483648, %v111_v28 }
  0xc0   :  { %v113_v31 = vsel %vm30_vm8, %v112_v29, %v111_v28 }
  0xc1   :  { %v116_v32 = vsel %vm29_vm9, %v217_v15, %v113_v31 }
  0xc2   :  { %169 = vcosq.f32 %v116_v32 }
  0xc3   :  { %171 = vsinq.f32 %v116_v32 }
  0xcf   :  { %v170_v37 = vpop.eup %169 }
  0xd0   :  { %v172_v38 = vpop.eup %171  ;;  %v128_v39 = vxor.u32 2147483648, %v170_v37 }
  0xd1   :  { %v125_v40 = vxor.u32 2147483648, %v172_v38 }
  0xd2   :  { %v129_v41 = vsel %vm127_vm10, %v128_v39, %v172_v38 }
  0xd3   :  { %v126_v17 = vsel %vm124_vm11, %v170_v37, %v125_v40 }
  0xd4   :  { %v130_v42 = vsel %vm123_vm12, %v126_v17, %v129_v41 }
  0xd5   :  { %v131_v43 = vsel %vm120_vm14, nan, %v130_v42 }
  0xd6   :  { %133 = vst.msk [vmem:[#allocation2] sm:$0xff] %vm132_vm13, %v131_v43 }
  0xd7   :  { %184 = shalt.err (!%p181_p4)
}
  0xd8   :  { %143 = dma.vmem_to_hbm [thread:$0]  %s141_s8, 128, %s242_s1, [#allocation3]  }
  0xd9   :  { %193 = dma.done.wait [#allocation3], 128  }
  0xda   :  { %194 = vsyncadd [#allocation3], 4294967168 }
  0xdb   :  { %147 = vsyncpa [#allocation3], 1 }

</bundles_post_ra>
